<compile_context>
chip_gen: v7x
topology: tpu7x:2x2x1
jax: 0.10.0
libtpu: 0.0.40
codegen_flags: <defaults>
</compile_context>

<pallas_src>
import numpy as np

import jax
import jax.numpy as jnp
from jax.experimental import pallas as pl
from jax.experimental.pallas import tpu as pltpu

EPS = 16.0 / 255.0
NOISE_SCALE = 0.05
LANES = 1024          # lane-dense slab width (multiple of 128)
MAX_BLOCK_ROWS = 512  # (512, 1024) f32 block = 2 MiB per stream


def _perturb_kernel(x_ref, n_ref, o_ref):
    x = x_ref[...].astype(jnp.float32)
    noise = n_ref[...].astype(jnp.float32)
    img_m = x + noise * NOISE_SCALE
    # project back into the eps-ball around the original image
    img_m = jnp.minimum(jnp.maximum(img_m, x - EPS), x + EPS)
    # valid image range
    o_ref[...] = jnp.clip(img_m, 0.0, 1.0).astype(o_ref.dtype)


def _perturb_jnp(x, noise):
    img_m = x + noise * NOISE_SCALE
    img_m = jnp.minimum(jnp.maximum(img_m, x - EPS), x + EPS)
    return jnp.clip(img_m, 0.0, 1.0)


@jax.jit
def perturb(img, key):
    """img: NCHW float tensor. key: jax PRNG key. Returns perturbed image."""
    orig_shape = img.shape
    orig_dtype = img.dtype

    # Keep bf16 in bf16 (halves HBM traffic on v6e/v7x); everything else in f32.
    if orig_dtype in (jnp.bfloat16, jnp.float32):
        compute_dtype = orig_dtype
    else:
        compute_dtype = jnp.float32

    noise = jax.random.normal(key, orig_shape, dtype=compute_dtype)

    x_flat = img.astype(compute_dtype).reshape(-1)
    noise_flat = noise.reshape(-1)
    n = x_flat.shape[0]

    body = (n // LANES) * LANES
    tail = n - body

    parts = []
    if body > 0:
        rows = body // LANES
        block_rows = min(MAX_BLOCK_ROWS, rows)
        # (8, 128) rule: block dims must be divisible by (8, 128) or equal the
        # full array dims.  LANES is a multiple of 128; fix up rows if needed.
        if block_rows != rows and block_rows % 8 != 0:
            block_rows = rows

        x2d = x_flat[:body].reshape(rows, LANES)
        n2d = noise_flat[:body].reshape(rows, LANES)
        bytes_per_elem = np.dtype(compute_dtype).itemsize

        out2d = pl.pallas_call(
            _perturb_kernel,
            out_shape=jax.ShapeDtypeStruct((rows, LANES), compute_dtype),
            grid=(pl.cdiv(rows, block_rows),),
            in_specs=[
                pl.BlockSpec((block_rows, LANES), lambda i: (i, 0)),
                pl.BlockSpec((block_rows, LANES), lambda i: (i, 0)),
            ],
            out_specs=pl.BlockSpec((block_rows, LANES), lambda i: (i, 0)),
            compiler_params=pltpu.CompilerParams(
                dimension_semantics=("parallel",),
            ),
            cost_estimate=pl.CostEstimate(
                flops=8 * body,
                transcendentals=0,
                bytes_accessed=3 * body * bytes_per_elem,
            ),
        )(x2d, n2d)
        parts.append(out2d.reshape(-1))

    if tail > 0:
        # Tiny non-divisible remainder (< LANES elements): plain jnp, no padding.
        parts.append(
            _perturb_jnp(x_flat[body:], noise_flat[body:]).astype(compute_dtype)
        )

    out_flat = parts[0] if len(parts) == 1 else jnp.concatenate(parts)
    return out_flat.reshape(orig_shape).astype(orig_dtype)


if __name__ == "__main__":
    key = jax.random.PRNGKey(0)
    k_img, k_noise = jax.random.split(key)

    # Small NCHW image batch consistent with the module's image-domain usage.
    img = jax.random.uniform(k_img, (2, 4, 16, 16), dtype=jnp.float32)

    out = perturb(img, k_noise)
    out = jax.block_until_ready(out)

    assert out.shape == img.shape
    assert out.dtype == img.dtype

    # Reference with the identical noise stream.
    ref_noise = jax.random.normal(k_noise, img.shape, dtype=jnp.float32)
    ref = _perturb_jnp(img, ref_noise)
    assert bool(jnp.allclose(out, ref, atol=1e-6, rtol=1e-6))

    # Sanity: output stays within the eps-ball and [0, 1].
    assert bool(jnp.all(out <= jnp.minimum(img + EPS, 1.0) + 1e-6))
    assert bool(jnp.all(out >= jnp.maximum(img - EPS, 0.0) - 1e-6))

    print("KERNEL_OK")
</pallas_src>

<mosaic_0001>
module attributes {stable_mosaic.version = 11 : i64} {
  func.func @_perturb_kernel(%arg0: i32, %arg1: memref<2x1024xf32, #tpu.memory_space<vmem>>, %arg2: memref<2x1024xf32, #tpu.memory_space<vmem>>, %arg3: memref<2x1024xf32, #tpu.memory_space<vmem>>) attributes {dimension_semantics = [#tpu.dimension_semantics<parallel>], iteration_bounds = array<i64: 1>, scalar_prefetch = 0 : i64, scratch_operands = 0 : i64, tpu.core_type = #tpu.core_type<tc>, window_params = [{transform_indices = @transform_0, window_bounds = array<i64: 2, 1024>}, {transform_indices = @transform_1, window_bounds = array<i64: 2, 1024>}, {transform_indices = @transform_2, window_bounds = array<i64: 2, 1024>}]} {
    %c0 = arith.constant 0 : index
    %c0_0 = arith.constant 0 : index
    %0 = vector.load %arg1[%c0, %c0_0] : memref<2x1024xf32, #tpu.memory_space<vmem>>, vector<2x1024xf32>
    %c0_1 = arith.constant 0 : index
    %c0_2 = arith.constant 0 : index
    %1 = vector.load %arg2[%c0_1, %c0_2] : memref<2x1024xf32, #tpu.memory_space<vmem>>, vector<2x1024xf32>
    %cst = arith.constant 5.000000e-02 : f32
    %2 = vector.broadcast %cst : f32 to vector<2x1024xf32>
    %3 = arith.mulf %1, %2 : vector<2x1024xf32>
    %4 = arith.addf %0, %3 : vector<2x1024xf32>
    %cst_3 = arith.constant 6.274510e-02 : f32
    %5 = vector.broadcast %cst_3 : f32 to vector<2x1024xf32>
    %6 = arith.subf %0, %5 : vector<2x1024xf32>
    %7 = arith.maximumf %4, %6 : vector<2x1024xf32>
    %cst_4 = arith.constant 6.274510e-02 : f32
    %8 = vector.broadcast %cst_4 : f32 to vector<2x1024xf32>
    %9 = arith.addf %0, %8 : vector<2x1024xf32>
    %10 = arith.minimumf %7, %9 : vector<2x1024xf32>
    %cst_5 = arith.constant 0.000000e+00 : f32
    %cst_6 = arith.constant 1.000000e+00 : f32
    %11 = vector.broadcast %cst_5 : f32 to vector<2x1024xf32>
    %12 = arith.maximumf %11, %10 : vector<2x1024xf32>
    %13 = vector.broadcast %cst_6 : f32 to vector<2x1024xf32>
    %14 = arith.minimumf %13, %12 : vector<2x1024xf32>
    %c0_7 = arith.constant 0 : index
    %c0_8 = arith.constant 0 : index
    %15 = vector.load %arg3[%c0_7, %c0_8] : memref<2x1024xf32, #tpu.memory_space<vmem>>, vector<2x1024xf32>
    tpu.vector_store %arg3[%c0_7, %c0_8], %14 {strides = array<i32>} : memref<2x1024xf32, #tpu.memory_space<vmem>>, vector<2x1024xf32>,
    return
  }
  func.func @transform_0(%arg0: i32) -> (i32, i32) {
    %c0_i32 = arith.constant 0 : i32
    %c0_i32_0 = arith.constant 0 : i32
    return %arg0, %c0_i32 : i32, i32
  }
  func.func @transform_1(%arg0: i32) -> (i32, i32) {
    %c0_i32 = arith.constant 0 : i32
    %c0_i32_0 = arith.constant 0 : i32
    return %arg0, %c0_i32 : i32, i32
  }
  func.func @transform_2(%arg0: i32) -> (i32, i32) {
    %c0_i32 = arith.constant 0 : i32
    %c0_i32_0 = arith.constant 0 : i32
    return %arg0, %c0_i32 : i32, i32
  }
}

</mosaic_0001>

<bundles_post_ra>
// kernel: perturb.1
= control target key start
LH: loop header
LB: loop body
LE: loop exit
PB: predicated region body
PF: predicated region fallthrough
CT: control target
= control target key end

     0   :  { %s72_s0 = inlined_call_operand.vmem [shape: f32[2,1024], index: 0, kind: input, shape index: {}]   ;;  %s73_s1 = inlined_call_operand.vmem [shape: f32[2,1024], index: 1, kind: input, shape index: {}]   ;;  %s74_s2 = inlined_call_operand.vmem [shape: f32[2,1024], index: 2, kind: output, shape index: {}]  }
   0x1   :  { %v11_v0 = vld [vmem:[%s72_s0] sm:$0xff]  ;;  %v12_v2 = vld [vmem:[%s72_s0 + $0x8] sm:$0xff] }
   0x2   :  { %v13_v1 = vld [vmem:[%s73_s1] sm:$0xff]  ;;  %v37_v4 = vadd.f32 -0.0627451, %v11_v0  ;;  %v14_v5 = vld [vmem:[%s73_s1 + $0x8] sm:$0xff]  ;;  %v23_v7 = vadd.f32 0.0627451, %v11_v0 }
   0x3   :  { %v15_v3 = vmul.f32 0.05, %v13_v1  ;;  %v16_v8 = vmul.f32 0.05, %v14_v5  ;;  %v38_v9 = vadd.f32 -0.0627451, %v12_v2 }
   0x4   :  { %v24_v12 = vadd.f32 0.0627451, %v12_v2 }
   0x5   :  { %v17_v6 = vadd.f32 %v15_v3, %v11_v0  ;;  %v18_v11 = vadd.f32 %v16_v8, %v12_v2 }
   0x7   :  { %v21_v10 = vmax.f32 %v17_v6, %v37_v4  ;;  %v22_v14 = vmax.f32 %v18_v11, %v38_v9 }
   0x9   :  { %v25_v13 = vmin.f32 %v21_v10, %v23_v7  ;;  %v26_v16 = vmin.f32 %v22_v14, %v24_v12 }
   0xb   :  { %v27_v15 = vmax.f32 %v25_v13, 0.0  ;;  %v28_v18 = vmax.f32 %v26_v16, 0.0 }
   0xd   :  { %v29_v17 = vmin.f32 %v27_v15, 1.0  ;;  %v30_v19 = vmin.f32 %v28_v18, 1.0 }
   0xf   :  { %31 = vst [vmem:[%s74_s2] sm:$0xff] %v29_v17  ;;  %32 = vst [vmem:[%s74_s2 + $0x8] sm:$0xff] %v30_v19 }

</bundles_post_ra>
